<compile_context>
chip_gen: v7x
topology: tpu7x:2x2x1
jax: 0.10.0
libtpu: 0.0.40
codegen_flags: <defaults>
</compile_context>

<pallas_src>
import functools

import jax
import jax.numpy as jnp
from jax.experimental import pallas as pl
from jax.experimental.pallas import tpu as pltpu

DIM_IN, DIM_H1, DIM_H2, DIM_OUT = 784, 64, 30, 10
OUT_PAD = 128  # lane-dense padded logits width (minimum unmasked-vst width)


def _round_up(x, m):
    return (x + m - 1) // m * m


# ----------------------------------------------------------------------------- kernel
def mlp_fmnist_kernel(x_ref, w1_ref, b1_ref, w2_ref, b2_ref, w3_ref, b3_ref, o_ref):
    # layer_input + ReLU: x/w1 in their streaming dtype (bf16 by default),
    # f32 accumulation on the MXU.
    h1 = jnp.dot(x_ref[...], w1_ref[...], preferred_element_type=jnp.float32) + b1_ref[...]
    h1 = jnp.maximum(h1, 0.0)                                         # (TB, 64)

    # layer_hidden1 + ReLU
    h2 = jnp.dot(h1, w2_ref[...], preferred_element_type=jnp.float32) + b2_ref[...]
    h2 = jnp.maximum(h2, 0.0)                                         # (TB, 30)

    # dropout (eval mode) = identity; the following ReLU is a no-op on a ReLU
    # output, so it is omitted entirely.
    # TODO(synk): training-mode dropout (p=0.5) would need pltpu.prng_random_bits masking.

    # layer_hidden2 -- padded to 128 output lanes (pad cols: w=0, b=-1e30).
    logits = jnp.dot(h2, w3_ref[...], preferred_element_type=jnp.float32) + b3_ref[...]  # (TB, 128)

    # LogSoftmax along dim=1 (numerically stable).  Padded columns contribute
    # exp(-1e30 - m) == 0 to the sum and never win the max, so columns 0..9 are
    # exactly the log-softmax over the real 10 classes.
    m = jnp.max(logits, axis=1, keepdims=True)
    shifted = logits - m
    lse = jnp.log(jnp.sum(jnp.exp(shifted), axis=1, keepdims=True))
    o_ref[...] = (shifted - lse).astype(o_ref.dtype)


# ----------------------------------------------------------------------------- param prep (once, outside jit)
def prepare_params(params, *, x_dtype=jnp.bfloat16):
    """One-time param massaging (hoisted out of the per-call jit body).

    - w1 cast to the x streaming dtype (bf16 default) -> native-rate MXU matmul.
    - last layer padded to 128 lane-dense outputs: pad weights 0, pad bias -1e30.
    """
    w1, b1, w2, b2, w3, b3 = params
    w1c = w1.astype(x_dtype)
    w3p = jnp.zeros((DIM_H2, OUT_PAD), jnp.float32).at[:, :DIM_OUT].set(w3)
    b3p = jnp.full((1, OUT_PAD), -1e30, jnp.float32).at[:, :DIM_OUT].set(b3)
    return (w1c, b1, w2, b2, w3p, b3p)


def default_launch_config(x_dtype=jnp.bfloat16):
    """Per-generation tile / VMEM-limit defaults (see perf review)."""
    try:
        kind = jax.devices()[0].device_kind.lower()
    except Exception:  # pragma: no cover - defensive
        kind = ""
    itemsize = jnp.dtype(x_dtype).itemsize
    if "v7" in kind:
        # v7x: 64 MiB VMEM per TensorCore -> cap the limit and only allow the
        # 4096-row tile when x is streamed in <=2 bytes/elem.
        tile_b = 4096 if itemsize <= 2 else 2048
        vmem_limit = 48 * 1024 * 1024
    else:
        # v5e / v6e: 128 MiB physical VMEM.
        tile_b = 4096
        vmem_limit = 64 * 1024 * 1024
    return tile_b, vmem_limit


# ----------------------------------------------------------------------------- forward
@functools.partial(jax.jit,
                   static_argnames=("tile_b", "out_dtype", "vmem_limit_bytes"))
def mlp_fmnist_forward(x_nchw, prepared_params, *, tile_b=2048,
                       out_dtype=jnp.float32,
                       vmem_limit_bytes=48 * 1024 * 1024):
    w1, b1, w2, b2, w3p, b3p = prepared_params
    x_dtype = w1.dtype
    B = x_nchw.shape[0]

    # Flatten exactly like torch: x.view(-1, C*H*W); stream in w1's dtype
    # (bf16 default; accumulation in the kernel stays f32).
    x_flat = x_nchw.reshape(B, -1).astype(x_dtype)                    # (B, 784)

    # Batch tiling: tile aligned to the sublane packing of the streamed dtype.
    align = 8 if jnp.dtype(x_dtype).itemsize >= 4 else 16
    tb = min(int(tile_b), _round_up(B, align))
    tb = _round_up(tb, align)
    B_pad = _round_up(B, tb)
    if B_pad != B:
        x_flat = jnp.pad(x_flat, ((0, B_pad - B), (0, 0)))
    grid = (B_pad // tb,)

    const = lambda shape: pl.BlockSpec(shape, lambda i: tuple(0 for _ in shape))

    x_bytes = jnp.dtype(x_dtype).itemsize
    o_bytes = jnp.dtype(out_dtype).itemsize
    param_bytes = (x_bytes * DIM_IN * DIM_H1
                   + 4 * (DIM_H1 + DIM_H1 * DIM_H2 + DIM_H2
                          + DIM_H2 * OUT_PAD + OUT_PAD))
    cost = pl.CostEstimate(
        flops=2 * B_pad * (DIM_IN * DIM_H1 + DIM_H1 * DIM_H2 + DIM_H2 * OUT_PAD),
        bytes_accessed=B_pad * DIM_IN * x_bytes + B_pad * OUT_PAD * o_bytes + param_bytes,
        transcendentals=B_pad * (OUT_PAD + 1),
    )

    # TODO(synk): on v7x, verify in the profile that the batch axis shards over
    # both TensorCores; if one TC idles, switch to pltpu.CORE_PARALLEL.
    out_pad = pl.pallas_call(
        mlp_fmnist_kernel,
        out_shape=jax.ShapeDtypeStruct((B_pad, OUT_PAD), out_dtype),
        grid=grid,
        in_specs=[
            pl.BlockSpec((tb, DIM_IN), lambda i: (i, 0)),   # x: tiled over batch (double-buffered)
            const((DIM_IN, DIM_H1)),                        # weights/biases: resident
            const((1, DIM_H1)),
            const((DIM_H1, DIM_H2)),
            const((1, DIM_H2)),
            const((DIM_H2, OUT_PAD)),
            const((1, OUT_PAD)),
        ],
        out_specs=pl.BlockSpec((tb, OUT_PAD), lambda i: (i, 0)),
        compiler_params=pltpu.CompilerParams(
            dimension_semantics=("parallel",),
            vmem_limit_bytes=int(vmem_limit_bytes),
        ),
        cost_estimate=cost,
    )(x_flat, w1, b1, w2, b2, w3p, b3p)

    # Padded batch rows / padded class columns are garbage by construction:
    # never consume out_pad before this slice.
    return out_pad[:B, :DIM_OUT]


# ----------------------------------------------------------------------------- init / reference
def init_params(key):
    """Deterministic init matching nn.Linear shapes.

    PyTorch Linear stores weight (out, in); we build (out, in) and transpose
    to (in, out) for the kernel so semantics (x @ W.T + b) are preserved.
    """
    ks = jax.random.split(key, 6)

    def linear(kw, kb, fan_in, fan_out):
        bound = 1.0 / jnp.sqrt(fan_in)
        w_oi = jax.random.uniform(kw, (fan_out, fan_in), jnp.float32, -bound, bound)
        b = jax.random.uniform(kb, (1, fan_out), jnp.float32, -bound, bound)
        return w_oi.T, b  # (in, out), (1, out)

    w1, b1 = linear(ks[0], ks[1], DIM_IN, DIM_H1)
    w2, b2 = linear(ks[2], ks[3], DIM_H1, DIM_H2)
    w3, b3 = linear(ks[4], ks[5], DIM_H2, DIM_OUT)
    return (w1, b1, w2, b2, w3, b3)


def reference_forward(x_nchw, params, x_dtype=jnp.float32):
    """Pure-JAX reference identical to the PyTorch forward (eval mode).

    x_dtype lets us reproduce the bf16-streamed variant (inputs rounded to
    bf16, accumulation in f32) for a tight-tolerance comparison.
    """
    w1, b1, w2, b2, w3, b3 = params
    hp = jax.lax.Precision.HIGHEST
    x = x_nchw.reshape(x_nchw.shape[0], -1).astype(x_dtype).astype(jnp.float32)
    w1f = w1.astype(x_dtype).astype(jnp.float32)
    h = jnp.maximum(jnp.dot(x, w1f, precision=hp) + b1, 0.0)
    h = jnp.maximum(jnp.dot(h, w2, precision=hp) + b2, 0.0)
    h = jnp.maximum(h, 0.0)  # dropout(eval)=identity, then ReLU (no-op)
    logits = jnp.dot(h, w3, precision=hp) + b3
    return jax.nn.log_softmax(logits, axis=1)


# ----------------------------------------------------------------------------- main
if __name__ == "__main__":
    key = jax.random.PRNGKey(0)
    k_x, k_p = jax.random.split(key)

    # Small test that still exercises multi-tile grid + ragged-batch padding.
    B = 20
    x = jax.random.normal(k_x, (B, 1, 28, 28), dtype=jnp.float32)  # NCHW -> 784
    params = init_params(k_p)

    # 1) Strict torch-f32 semantics path (tile_b=8 -> B_pad=24, grid=(3,)).
    prep_f32 = prepare_params(params, x_dtype=jnp.float32)
    out_f32 = jax.block_until_ready(mlp_fmnist_forward(x, prep_f32, tile_b=8))
    ref_f32 = reference_forward(x, params, x_dtype=jnp.float32)
    assert out_f32.shape == (B, DIM_OUT)
    assert jnp.allclose(out_f32, ref_f32, atol=1e-3, rtol=1e-3), "f32 path mismatch"

    # 2) Default fast path: bf16 x + bf16 w1 streaming, f32 accumulation,
    #    per-generation tile / VMEM-limit defaults.
    tile_b, vmem_limit = default_launch_config(jnp.bfloat16)
    prep_bf16 = prepare_params(params)  # bf16 default
    out_bf16 = jax.block_until_ready(
        mlp_fmnist_forward(x, prep_bf16, tile_b=tile_b,
                           vmem_limit_bytes=vmem_limit))
    ref_bf16 = reference_forward(x, params, x_dtype=jnp.bfloat16)
    assert out_bf16.shape == (B, DIM_OUT)
    assert jnp.allclose(out_bf16, ref_bf16, atol=2e-3, rtol=2e-3), "bf16 path mismatch"

    print("KERNEL_OK")
</pallas_src>

<mosaic_0001>
module attributes {stable_mosaic.version = 11 : i64} {
  func.func @mlp_fmnist_kernel(%arg0: i32, %arg1: memref<8x784xf32, #tpu.memory_space<vmem>>, %arg2: memref<784x64xf32, #tpu.memory_space<vmem>>, %arg3: memref<1x64xf32, #tpu.memory_space<vmem>>, %arg4: memref<64x30xf32, #tpu.memory_space<vmem>>, %arg5: memref<1x30xf32, #tpu.memory_space<vmem>>, %arg6: memref<30x128xf32, #tpu.memory_space<vmem>>, %arg7: memref<1x128xf32, #tpu.memory_space<vmem>>, %arg8: memref<8x128xf32, #tpu.memory_space<vmem>>) attributes {dimension_semantics = [#tpu.dimension_semantics<parallel>], iteration_bounds = array<i64: 3>, scalar_prefetch = 0 : i64, scratch_operands = 0 : i64, tpu.core_type = #tpu.core_type<tc>, window_params = [{transform_indices = @transform_0, window_bounds = array<i64: 8, 784>}, {pipeline_mode = #tpu.pipeline_mode<synchronous>, transform_indices = @transform_1, window_bounds = array<i64: 784, 64>}, {pipeline_mode = #tpu.pipeline_mode<synchronous>, transform_indices = @transform_2, window_bounds = array<i64: 1, 64>}, {pipeline_mode = #tpu.pipeline_mode<synchronous>, transform_indices = @transform_3, window_bounds = array<i64: 64, 30>}, {pipeline_mode = #tpu.pipeline_mode<synchronous>, transform_indices = @transform_4, window_bounds = array<i64: 1, 30>}, {pipeline_mode = #tpu.pipeline_mode<synchronous>, transform_indices = @transform_5, window_bounds = array<i64: 30, 128>}, {pipeline_mode = #tpu.pipeline_mode<synchronous>, transform_indices = @transform_6, window_bounds = array<i64: 1, 128>}, {transform_indices = @transform_7, window_bounds = array<i64: 8, 128>}]} {
    %c0 = arith.constant 0 : index
    %c0_0 = arith.constant 0 : index
    %0 = vector.load %arg1[%c0, %c0_0] : memref<8x784xf32, #tpu.memory_space<vmem>>, vector<8x784xf32>
    %c0_1 = arith.constant 0 : index
    %c0_2 = arith.constant 0 : index
    %1 = vector.load %arg2[%c0_1, %c0_2] : memref<784x64xf32, #tpu.memory_space<vmem>>, vector<784x64xf32>
    %cst = arith.constant dense<0.000000e+00> : vector<8x64xf32>
    %2 = tpu.matmul %0, %1, %cst {dimension_numbers = #tpu.dot_dimension_numbers<[1], [0], [0], [1], [0, 0, 1, 1], [], []>} : vector<8x784xf32>, vector<784x64xf32>, vector<8x64xf32> -> vector<8x64xf32>
    %c0_3 = arith.constant 0 : index
    %c0_4 = arith.constant 0 : index
    %3 = vector.load %arg3[%c0_3, %c0_4] : memref<1x64xf32, #tpu.memory_space<vmem>>, vector<1x64xf32>
    %4 = vector.broadcast %3 : vector<1x64xf32> to vector<8x64xf32>
    %5 = arith.addf %2, %4 : vector<8x64xf32>
    %cst_5 = arith.constant 0.000000e+00 : f32
    %6 = vector.broadcast %cst_5 : f32 to vector<8x64xf32>
    %7 = arith.maximumf %5, %6 : vector<8x64xf32>
    %c0_6 = arith.constant 0 : index
    %c0_7 = arith.constant 0 : index
    %8 = vector.load %arg4[%c0_6, %c0_7] : memref<64x30xf32, #tpu.memory_space<vmem>>, vector<64x30xf32>
    %cst_8 = arith.constant dense<0.000000e+00> : vector<8x30xf32>
    %9 = tpu.matmul %7, %8, %cst_8 {dimension_numbers = #tpu.dot_dimension_numbers<[1], [0], [0], [1], [0, 0, 1, 1], [], []>} : vector<8x64xf32>, vector<64x30xf32>, vector<8x30xf32> -> vector<8x30xf32>
    %c0_9 = arith.constant 0 : index
    %c0_10 = arith.constant 0 : index
    %10 = vector.load %arg5[%c0_9, %c0_10] : memref<1x30xf32, #tpu.memory_space<vmem>>, vector<1x30xf32>
    %11 = vector.broadcast %10 : vector<1x30xf32> to vector<8x30xf32>
    %12 = arith.addf %9, %11 : vector<8x30xf32>
    %cst_11 = arith.constant 0.000000e+00 : f32
    %13 = vector.broadcast %cst_11 : f32 to vector<8x30xf32>
    %14 = arith.maximumf %12, %13 : vector<8x30xf32>
    %c0_12 = arith.constant 0 : index
    %c0_13 = arith.constant 0 : index
    %15 = vector.load %arg6[%c0_12, %c0_13] : memref<30x128xf32, #tpu.memory_space<vmem>>, vector<30x128xf32>
    %cst_14 = arith.constant dense<0.000000e+00> : vector<8x128xf32>
    %16 = tpu.matmul %14, %15, %cst_14 {dimension_numbers = #tpu.dot_dimension_numbers<[1], [0], [0], [1], [0, 0, 1, 1], [], []>} : vector<8x30xf32>, vector<30x128xf32>, vector<8x128xf32> -> vector<8x128xf32>
    %c0_15 = arith.constant 0 : index
    %c0_16 = arith.constant 0 : index
    %17 = vector.load %arg7[%c0_15, %c0_16] : memref<1x128xf32, #tpu.memory_space<vmem>>, vector<1x128xf32>
    %18 = vector.broadcast %17 : vector<1x128xf32> to vector<8x128xf32>
    %19 = arith.addf %16, %18 : vector<8x128xf32>
    %cst_17 = arith.constant dense<0xFF800000> : vector<8xf32>
    %20 = vector.multi_reduction <maximumf>, %19, %cst_17 [1] : vector<8x128xf32> to vector<8xf32>
    %21 = vector.shape_cast %20 : vector<8xf32> to vector<8x1xf32>
    %22 = vector.broadcast %21 : vector<8x1xf32> to vector<8x128xf32>
    %23 = arith.subf %19, %22 : vector<8x128xf32>
    %24 = math.exp %23 : vector<8x128xf32>
    %cst_18 = arith.constant dense<0.000000e+00> : vector<8xf32>
    %25 = vector.multi_reduction <add>, %24, %cst_18 [1] : vector<8x128xf32> to vector<8xf32>
    %26 = vector.shape_cast %25 : vector<8xf32> to vector<8x1xf32>
    %27 = math.log %26 : vector<8x1xf32>
    %28 = vector.broadcast %27 : vector<8x1xf32> to vector<8x128xf32>
    %29 = arith.subf %23, %28 : vector<8x128xf32>
    %c0_19 = arith.constant 0 : index
    %c0_20 = arith.constant 0 : index
    %30 = vector.load %arg8[%c0_19, %c0_20] : memref<8x128xf32, #tpu.memory_space<vmem>>, vector<8x128xf32>
    tpu.vector_store %arg8[%c0_19, %c0_20], %29 {strides = array<i32>} : memref<8x128xf32, #tpu.memory_space<vmem>>, vector<8x128xf32>,
    return
  }
  func.func @transform_0(%arg0: i32) -> (i32, i32) {
    %c0_i32 = arith.constant 0 : i32
    %c0_i32_0 = arith.constant 0 : i32
    return %arg0, %c0_i32 : i32, i32
  }
  func.func @transform_1(%arg0: i32) -> (i32, i32) {
    %c0_i32 = arith.constant 0 : i32
    %c0_i32_0 = arith.constant 0 : i32
    %c0_i32_1 = arith.constant 0 : i32
    return %c0_i32, %c0_i32_0 : i32, i32
  }
  func.func @transform_2(%arg0: i32) -> (i32, i32) {
    %c0_i32 = arith.constant 0 : i32
    %c0_i32_0 = arith.constant 0 : i32
    %c0_i32_1 = arith.constant 0 : i32
    return %c0_i32, %c0_i32_0 : i32, i32
  }
  func.func @transform_3(%arg0: i32) -> (i32, i32) {
    %c0_i32 = arith.constant 0 : i32
    %c0_i32_0 = arith.constant 0 : i32
    %c0_i32_1 = arith.constant 0 : i32
    return %c0_i32, %c0_i32_0 : i32, i32
  }
  func.func @transform_4(%arg0: i32) -> (i32, i32) {
    %c0_i32 = arith.constant 0 : i32
    %c0_i32_0 = arith.constant 0 : i32
    %c0_i32_1 = arith.constant 0 : i32
    return %c0_i32, %c0_i32_0 : i32, i32
  }
  func.func @transform_5(%arg0: i32) -> (i32, i32) {
    %c0_i32 = arith.constant 0 : i32
    %c0_i32_0 = arith.constant 0 : i32
    %c0_i32_1 = arith.constant 0 : i32
    return %c0_i32, %c0_i32_0 : i32, i32
  }
  func.func @transform_6(%arg0: i32) -> (i32, i32) {
    %c0_i32 = arith.constant 0 : i32
    %c0_i32_0 = arith.constant 0 : i32
    %c0_i32_1 = arith.constant 0 : i32
    return %c0_i32, %c0_i32_0 : i32, i32
  }
  func.func @transform_7(%arg0: i32) -> (i32, i32) {
    %c0_i32 = arith.constant 0 : i32
    %c0_i32_0 = arith.constant 0 : i32
    return %arg0, %c0_i32 : i32, i32
  }
}

</mosaic_0001>

<bundles_post_ra>
// kernel: mlp_fmnist_forward.1
= control target key start
LH: loop header
LB: loop body
LE: loop exit
PB: predicated region body
PF: predicated region fallthrough
CT: control target
= control target key end

     0   :  { %s1279_s24 = smov 0   ;;  %s1671_s0 = inlined_call_operand.vmem [shape: f32[24,784], index: 0, kind: input, shape index: {}]   ;;  %s1672_s1 = inlined_call_operand.vmem [shape: f32[784,64], index: 1, kind: input, shape index: {}]   ;;  %s1673_s2 = inlined_call_operand.vmem [shape: f32[1,64], index: 2, kind: input, shape index: {}]   ;;  %s1674_s3 = inlined_call_operand.vmem [shape: f32[64,30], index: 3, kind: input, shape index: {}]   ;;  %s1675_s4 = inlined_call_operand.vmem [shape: f32[1,30], index: 4, kind: input, shape index: {}]   ;;  %s1676_s5 = inlined_call_operand.vmem [shape: f32[30,128], index: 5, kind: input, shape index: {}]   ;;  %s1677_s6 = inlined_call_operand.vmem [shape: f32[1,128], index: 6, kind: input, shape index: {}]   ;;  %s1678_s7 = inlined_call_operand.vmem [shape: f32[24,128], index: 7, kind: output, shape index: {}]  }
   0x1 LB: > { %s917_s25 = sadd.s32 4294967295, %s1233_s24   ;;  %p921_p0 = scmp.ge.s32.totalorder %s1233_s24, 1  ;;  %s1233_s24 = sphi %s1279_s24, %s17_s24  }
   0x2   : > { %p237_p1 = scmp.lt.s32.totalorder %s1233_s24, 4 }
   0x4   : > { %p238_p2 = pnand %p921_p0, %p237_p1 }
   0x5   : > { %v300_v0 = vld [vmem:[%s1672_s1 + $0x80] sm:$0xff] (!%p238_p2)  ;;  %v301_v1 = vld [vmem:[%s1672_s1 + $0x88] sm:$0xff] (!%p238_p2)  ;;  %v302_v11 = vld [vmem:[%s1672_s1 + $0x90] sm:$0xff] (!%p238_p2)  ;;  %p1343_p3 = scmp.lt.s32.totalorder (!%p238_p2), %s917_s25, 2  ;;  %vm1236_vm0 = vmmov (!%p238_p2), 0   ;;  %vm389_vm1 = vcmask (!%p238_p2), 130048  }
   0x6   : > { %241 = sbr.rel (%p238_p2) target bundleno = 1038 (0x40e), region = 48  ;;  %v284_v2 = vld [vmem:[%s1672_s1] sm:$0xff] (!%p238_p2)  ;;  %v1092_v3 = vpack.c.bf16 (!%p238_p2), %v301_v1, %v300_v0  ;;  %v285_v4 = vld [vmem:[%s1672_s1 + $0x8] sm:$0xff] (!%p238_p2)  ;;  %v303_v13 = vld [vmem:[%s1672_s1 + $0x98] sm:$0xff] (!%p238_p2)  ;;  %vm689_vm2 = vcmask (!%p238_p2), 523264   ;;  %vm779_vm3 = vcmask (!%p238_p2), 1045504  }
   0x7   : > { %v332_v5 = vld [vmem:[%s1672_s1 + $0x180] sm:$0xff] (!%p238_p2)  ;;  %v333_v6 = vld [vmem:[%s1672_s1 + $0x188] sm:$0xff] (!%p238_p2)  ;;  %v1094_v7 = vpack.c.bf16 (!%p238_p2), %v285_v4, %v284_v2  ;;  %v286_v14 = vld [vmem:[%s1672_s1 + $0x10] sm:$0xff] (!%p238_p2)  ;;  %v1096_v16 = vpack.c.bf16 (!%p238_p2), %v303_v13, %v302_v11  ;;  %vm1238_vm4 = vmmov (!%p238_p2), 1   ;;  %vm775_vm6 = vcmask (!%p238_p2), 244736  }
   0x8   : > { %v1124_v8 = vpack.c.bf16 (!%p238_p2), %v333_v6, %v332_v5  ;;  %v316_v9 = vld [vmem:[%s1672_s1 + $0x100] sm:$0xff] (!%p238_p2)  ;;  %v317_v10 = vld [vmem:[%s1672_s1 + $0x108] sm:$0xff] (!%p238_p2)  ;;  %1093 = vmatprep.subr.bf16.mxu0 (!%p238_p2), %v1092_v3  ;;  %v287_v15 = vld [vmem:[%s1672_s1 + $0x18] sm:$0xff] (!%p238_p2) }
   0x9   : > { %v1126_v12 = vpack.c.bf16 (!%p238_p2), %v317_v10, %v316_v9  ;;  %1095 = vmatpush3.bf16.msra.mxu0 (!%p238_p2), %v1094_v7  ;;  %v1098_v17 = vpack.c.bf16 (!%p238_p2), %v287_v15, %v286_v14  ;;  %v334_v18 = vld [vmem:[%s1672_s1 + $0x190] sm:$0xff] (!%p238_p2)  ;;  %v335_v19 = vld [vmem:[%s1672_s1 + $0x198] sm:$0xff] (!%p238_p2)  ;;  %v304_v23 = vld [vmem:[%s1672_s1 + $0xa0] sm:$0xff] (!%p238_p2) }
   0xa   : > { %1125 = vmatprep.subr.bf16.mxu1 (!%p238_p2), %v1124_v8  ;;  %v318_v20 = vld [vmem:[%s1672_s1 + $0x110] sm:$0xff] (!%p238_p2)  ;;  %v1128_v21 = vpack.c.bf16 (!%p238_p2), %v335_v19, %v334_v18  ;;  %v319_v22 = vld [vmem:[%s1672_s1 + $0x118] sm:$0xff] (!%p238_p2)  ;;  %v305_v24 = vld [vmem:[%s1672_s1 + $0xa8] sm:$0xff] (!%p238_p2)  ;;  %1097 = vmatprep.subr.bf16.mxu0 (!%p238_p2), %v1096_v16 }
   0xb   : > { %1127 = vmatpush3.bf16.msra.mxu1 (!%p238_p2), %v1126_v12  ;;  %v1130_v25 = vpack.c.bf16 (!%p238_p2), %v319_v22, %v318_v20  ;;  %v1100_v26 = vpack.c.bf16 (!%p238_p2), %v305_v24, %v304_v23  ;;  %v288_v27 = vld [vmem:[%s1672_s1 + $0x20] sm:$0xff] (!%p238_p2)  ;;  %v289_v28 = vld [vmem:[%s1672_s1 + $0x28] sm:$0xff] (!%p238_p2)  ;;  %v306_v35 = vld [vmem:[%s1672_s1 + $0xb0] sm:$0xff] (!%p238_p2) }
   0xc   : > { %v336_v29 = vld [vmem:[%s1672_s1 + $0x1a0] sm:$0xff] (!%p238_p2)  ;;  %1129 = vmatprep.subr.bf16.mxu1 (!%p238_p2), %v1128_v21  ;;  %v337_v30 = vld [vmem:[%s1672_s1 + $0x1a8] sm:$0xff] (!%p238_p2)  ;;  %v1102_v33 = vpack.c.bf16 (!%p238_p2), %v289_v28, %v288_v27  ;;  %v307_v36 = vld [vmem:[%s1672_s1 + $0xb8] sm:$0xff] (!%p238_p2) }
   0xd   : > { %v320_v31 = vld [vmem:[%s1672_s1 + $0x120] sm:$0xff]  ;;  %v321_v32 = vld [vmem:[%s1672_s1 + $0x128] sm:$0xff]  ;;  %1099 = vmatpush3.bf16.msra.mxu0 %v1098_v17  ;;  %v1132_v34 = vpack.c.bf16 %v337_v30, %v336_v29  ;;  %v290_v37 = vld [vmem:[%s1672_s1 + $0x30] sm:$0xff]  ;;  %v1104_v39 = vpack.c.bf16 %v307_v36, %v306_v35  ;;  %s1681_s25 = smov (!%p1343_p3, %s917_s25), 2 }
   0xe   : > { %1101 = vmatprep.subr.bf16.mxu0 %v1100_v26  ;;  %v1134_v38 = vpack.c.bf16 %v321_v32, %v320_v31  ;;  %v291_v40 = vld [vmem:[%s1672_s1 + $0x38] sm:$0xff]  ;;  %v338_v41 = vld [vmem:[%s1672_s1 + $0x1b0] sm:$0xff]  ;;  %v308_v46 = vld [vmem:[%s1672_s1 + $0xc0] sm:$0xff]  ;;  %s1210_s20 = smul.u32 56, %s1681_s25  ;;  %s923_s8 = sshll.u32 %s1681_s25, 3 }
   0xf   : > { %1131 = vmatpush3.bf16.msra.mxu1 %v1130_v25  ;;  %v339_v42 = vld [vmem:[%s1672_s1 + $0x1b8] sm:$0xff]  ;;  %v322_v44 = vld [vmem:[%s1672_s1 + $0x130] sm:$0xff]  ;;  %v309_v47 = vld [vmem:[%s1672_s1 + $0xc8] sm:$0xff]  ;;  %v1106_v48 = vpack.c.bf16 %v291_v40, %v290_v37  ;;  %s276_s10 = scalar_lea.vmem %s1678_s7, %s923_s8 }
  0x10   : > { %1133 = vmatprep.subr.bf16.mxu1 %v1132_v34  ;;  %v1136_v43 = vpack.c.bf16 %v339_v42, %v338_v41  ;;  %v323_v45 = vld [vmem:[%s1672_s1 + $0x138] sm:$0xff]  ;;  %v340_v49 = vld [vmem:[%s1672_s1 + $0x1c0] sm:$0xff]  ;;  %v341_v50 = vld [vmem:[%s1672_s1 + $0x1c8] sm:$0xff]  ;;  %v1108_v52 = vpack.c.bf16 %v309_v47, %v308_v46  ;;  %s1444_s17 = scalar_lea.vmem %s1671_s0, %s1210_s20 }
  0x11   : > { %1103 = vmatpush3.bf16.msra.mxu0 %v1102_v33  ;;  %v1138_v51 = vpack.c.bf16 %v323_v45, %v322_v44  ;;  %v292_v53 = vld [vmem:[%s1672_s1 + $0x40] sm:$0xff]  ;;  %v293_v54 = vld [vmem:[%s1672_s1 + $0x48] sm:$0xff]  ;;  %v1140_v56 = vpack.c.bf16 %v341_v50, %v340_v49  ;;  %v310_v58 = vld [vmem:[%s1672_s1 + $0xd0] sm:$0xff]  ;;  %v1235_v50 = vmov 0.0|0.0  }
  0x12   : > { %1105 = vmatprep.subr.bf16.mxu0 %v1104_v39  ;;  %v324_v55 = vld [vmem:[%s1672_s1 + $0x140] sm:$0xff]  ;;  %v325_v57 = vld [vmem:[%s1672_s1 + $0x148] sm:$0xff]  ;;  %v311_v59 = vld [vmem:[%s1672_s1 + $0xd8] sm:$0xff]  ;;  %v1110_v62 = vpack.c.bf16 %v293_v54, %v292_v53 }
  0x13   : > { %1135 = vmatpush3.bf16.msra.mxu1 %v1134_v38  ;;  %v342_v60 = vld [vmem:[%s1672_s1 + $0x1d0] sm:$0xff]  ;;  %v343_v61 = vld [vmem:[%s1672_s1 + $0x1d8] sm:$0xff]  ;;  %v1142_v63 = vpack.c.bf16 %v325_v57, %v324_v55  ;;  %v1112_v0 = vpack.c.bf16 %v311_v59, %v310_v58  ;;  %v312_v6 = vld [vmem:[%s1672_s1 + $0xe0] sm:$0xff] }
  0x14   : > { %1137 = vmatprep.subr.bf16.mxu1 %v1136_v43  ;;  %v294_v1 = vld [vmem:[%s1672_s1 + $0x50] sm:$0xff]  ;;  %v295_v2 = vld [vmem:[%s1672_s1 + $0x58] sm:$0xff]  ;;  %v1144_v4 = vpack.c.bf16 %v343_v61, %v342_v60  ;;  %v313_v7 = vld [vmem:[%s1672_s1 + $0xe8] sm:$0xff]  ;;  %v1237_v60 = vmov 0.0  }
  0x15   : > { %1107 = vmatpush3.bf16.msra.mxu0 %v1106_v48  ;;  %v326_v3 = vld [vmem:[%s1672_s1 + $0x150] sm:$0xff]  ;;  %v327_v5 = vld [vmem:[%s1672_s1 + $0x158] sm:$0xff]  ;;  %v344_v8 = vld [vmem:[%s1672_s1 + $0x1e0] sm:$0xff]  ;;  %v1114_v10 = vpack.c.bf16 %v295_v2, %v294_v1  ;;  %v1116_v14 = vpack.c.bf16 %v313_v7, %v312_v6 }
  0x16   : > { %1109 = vmatprep.subr.bf16.mxu0 %v1108_v52  ;;  %v345_v9 = vld [vmem:[%s1672_s1 + $0x1e8] sm:$0xff]  ;;  %v296_v11 = vld [vmem:[%s1672_s1 + $0x60] sm:$0xff]  ;;  %v1146_v13 = vpack.c.bf16 %v327_v5, %v326_v3  ;;  %v314_v19 = vld [vmem:[%s1672_s1 + $0xf0] sm:$0xff] }
  0x17   : > { %1139 = vmatpush3.bf16.msra.mxu1 %v1138_v51  ;;  %v278_v12 = vld [vmem:[%s1444_s17 + $0x8] sm:$0xff]  ;;  %v328_v16 = vld [vmem:[%s1672_s1 + $0x160] sm:$0xff]  ;;  %v1148_v18 = vpack.c.bf16 %v345_v9, %v344_v8  ;;  %v315_v20 = vld [vmem:[%s1672_s1 + $0xf8] sm:$0xff] }
  0x18   : > { %1141 = vmatprep.subr.bf16.mxu1 %v1140_v56  ;;  %v297_v15 = vld [vmem:[%s1672_s1 + $0x68] sm:$0xff]  ;;  %457 = vmatprep.mubr.f32.mxu0 %v278_v12  ;;  %v280_v21 = vld [vmem:[%s1444_s17 + $0x18] sm:$0xff]  ;;  %v346_v22 = vld [vmem:[%s1672_s1 + $0x1f0] sm:$0xff]  ;;  %v1120_v26 = vpack.c.bf16 %v315_v20, %v314_v19 }
  0x19   : > { %1111 = vmatpush3.bf16.msra.mxu0 %v1110_v62  ;;  %v329_v17 = vld [vmem:[%s1672_s1 + $0x168] sm:$0xff]  ;;  %v347_v23 = vld [vmem:[%s1672_s1 + $0x1f8] sm:$0xff]  ;;  %527 = vmatprep.mubr.f32.mxu1 %v280_v21  ;;  %v1118_v24 = vpack.c.bf16 %v297_v15, %v296_v11  ;;  %v298_v27 = vld [vmem:[%s1672_s1 + $0x70] sm:$0xff] }
  0x1a   : > { %1113 = vmatprep.subr.bf16.mxu0 %v1112_v0  ;;  %v1150_v25 = vpack.c.bf16 %v329_v17, %v328_v16  ;;  %v299_v28 = vld [vmem:[%s1672_s1 + $0x78] sm:$0xff]  ;;  %v330_v29 = vld [vmem:[%s1672_s1 + $0x170] sm:$0xff]  ;;  %v1152_v30 = vpack.c.bf16 %v347_v23, %v346_v22  ;;  %v364_v32 = vld [vmem:[%s1672_s1 + $0x280] sm:$0xff] }
  0x1b   : > { %1143 = vmatpush3.bf16.msra.mxu1 %v1142_v63  ;;  %v331_v31 = vld [vmem:[%s1672_s1 + $0x178] sm:$0xff]  ;;  %v365_v33 = vld [vmem:[%s1672_s1 + $0x288] sm:$0xff]  ;;  %v1122_v34 = vpack.c.bf16 %v299_v28, %v298_v27  ;;  %v348_v37 = vld [vmem:[%s1672_s1 + $0x200] sm:$0xff] }
  0x1c   : > { %1145 = vmatprep.subr.bf16.mxu1 %v1144_v4  ;;  %v1154_v35 = vpack.c.bf16 %v331_v31, %v330_v29  ;;  %v1156_v36 = vpack.c.bf16 %v365_v33, %v364_v32  ;;  %v349_v38 = vld [vmem:[%s1672_s1 + $0x208] sm:$0xff]  ;;  %v366_v39 = vld [vmem:[%s1672_s1 + $0x290] sm:$0xff]  ;;  %v367_v40 = vld [vmem:[%s1672_s1 + $0x298] sm:$0xff] }
  0x1d   : > { %1115 = vmatpush3.bf16.msra.mxu0 %v1114_v10  ;;  %v277_v41 = vld [vmem:[%s1444_s17] sm:$0xff]  ;;  %v1158_v42 = vpack.c.bf16 %v349_v38, %v348_v37  ;;  %v279_v43 = vld [vmem:[%s1444_s17 + $0x10] sm:$0xff]  ;;  %v1160_v45 = vpack.c.bf16 %v367_v40, %v366_v39  ;;  %v351_v46 = vld [vmem:[%s1672_s1 + $0x218] sm:$0xff] }
  0x1e   : > { %1117 = vmatprep.subr.bf16.mxu0 %v1116_v14  ;;  %v350_v44 = vld [vmem:[%s1672_s1 + $0x210] sm:$0xff]  ;;  %v368_v47 = vld [vmem:[%s1672_s1 + $0x2a0] sm:$0xff]  ;;  %v369_v48 = vld [vmem:[%s1672_s1 + $0x2a8] sm:$0xff] }
  0x1f   : > { %1147 = vmatpush3.bf16.msra.mxu1 %v1146_v13  ;;  %v282_v49 = vld [vmem:[%s1444_s17 + $0x28] sm:$0xff]  ;;  %v380_v51 = vld [vmem:[%s1672_s1 + $0x300] sm:$0xff]  ;;  %v1162_v54 = vpack.c.bf16 %v351_v46, %v350_v44  ;;  %v1164_v55 = vpack.c.bf16 %v369_v48, %v368_v47  ;;  %v370_v58 = vld [vmem:[%s1672_s1 + $0x2b0] sm:$0xff] }
  0x20   : > { %1149 = vmatprep.subr.bf16.mxu1 %v1148_v18  ;;  %v381_v52 = vld [vmem:[%s1672_s1 + $0x308] sm:$0xff]  ;;  %v352_v56 = vld [vmem:[%s1672_s1 + $0x220] sm:$0xff]  ;;  %v371_v59 = vld [vmem:[%s1672_s1 + $0x2b8] sm:$0xff] }
  0x21   : > { %1119 = vmatpush3.bf16.msra.mxu0 %v1118_v24  ;;  %v1189_v53 = vpack.c.bf16 %v381_v52, %v380_v51  ;;  %v353_v57 = vld [vmem:[%s1672_s1 + $0x228] sm:$0xff]  ;;  %v283_v61 = vld [vmem:[%s1444_s17 + $0x30] sm:$0xff]  ;;  %v1168_v63 = vpack.c.bf16 %v371_v59, %v370_v58  ;;  %v355_v1 = vld [vmem:[%s1672_s1 + $0x238] sm:$0xff] }
  0x22   : > { %1121 = vmatprep.subr.bf16.mxu0 %v1120_v26  ;;  %v1166_v62 = vpack.c.bf16 %v353_v57, %v352_v56  ;;  %v354_v0 = vld [vmem:[%s1672_s1 + $0x230] sm:$0xff]  ;;  %v372_v2 = vld [vmem:[%s1672_s1 + $0x2c0] sm:$0xff]  ;;  %v373_v3 = vld [vmem:[%s1672_s1 + $0x2c8] sm:$0xff] }
  0x23   : > { %1151 = vmatpush3.bf16.msra.mxu1 %v1150_v25  ;;  %v1170_v4 = vpack.c.bf16 %v355_v1, %v354_v0  ;;  %v1172_v5 = vpack.c.bf16 %v373_v3, %v372_v2  ;;  %v356_v6 = vld [vmem:[%s1672_s1 + $0x240] sm:$0xff]  ;;  %v357_v7 = vld [vmem:[%s1672_s1 + $0x248] sm:$0xff]  ;;  %v374_v8 = vld [vmem:[%s1672_s1 + $0x2d0] sm:$0xff] }
  0x24   : > { %1153 = vmatprep.subr.bf16.mxu1 %v1152_v30  ;;  %v375_v9 = vld [vmem:[%s1672_s1 + $0x2d8] sm:$0xff]  ;;  %v1174_v10 = vpack.c.bf16 %v357_v7, %v356_v6  ;;  %v358_v12 = vld [vmem:[%s1672_s1 + $0x250] sm:$0xff]  ;;  %v376_v14 = vld [vmem:[%s1672_s1 + $0x2e0] sm:$0xff] }
  0x25   : > { %1123 = vmatpush3.bf16.msra.mxu0 %v1122_v34  ;;  %v1176_v11 = vpack.c.bf16 %v375_v9, %v374_v8  ;;  %v359_v13 = vld [vmem:[%s1672_s1 + $0x258] sm:$0xff]  ;;  %v377_v15 = vld [vmem:[%s1672_s1 + $0x2e8] sm:$0xff]  ;;  %v360_v18 = vld [vmem:[%s1672_s1 + $0x260] sm:$0xff] }
  0x26   : > { %1157 = vmatprep.subr.bf16.mxu0 %v1156_v36  ;;  %v1178_v16 = vpack.c.bf16 %v359_v13, %v358_v12  ;;  %v1180_v17 = vpack.c.bf16 %v377_v15, %v376_v14  ;;  %v361_v19 = vld [vmem:[%s1672_s1 + $0x268] sm:$0xff]  ;;  %v378_v20 = vld [vmem:[%s1672_s1 + $0x2f0] sm:$0xff]  ;;  %v379_v21 = vld [vmem:[%s1672_s1 + $0x2f8] sm:$0xff] }
  0x27   : > { %1155 = vmatpush3.bf16.msra.mxu1 %v1154_v35  ;;  %v1182_v22 = vpack.c.bf16 %v361_v19, %v360_v18  ;;  %v1184_v23 = vpack.c.bf16 %v379_v21, %v378_v20  ;;  %v362_v24 = vld [vmem:[%s1672_s1 + $0x270] sm:$0xff]  ;;  %v363_v25 = vld [vmem:[%s1672_s1 + $0x278] sm:$0xff]  ;;  %v281_v27 = vld [vmem:[%s1444_s17 + $0x20] sm:$0xff] }
  0x28   : > { %1188 = vmatprep.subr.bf16.mxu1 %v1235_v50  ;;  %458 = vmatmul.mubr.f32.vlgmr.msra.gmra.mrb[0].mxu0 %v277_v41  ;;  %v1186_v26 = vpack.c.bf16 %v363_v25, %v362_v24  ;;  %v674_v28 = vld [vmem:[%s1674_s3] sm:$0xff]  ;;  %v675_v29 = vld [vmem:[%s1674_s3 + $0x8] sm:$0xff]  ;;  %v676_v30 = vld [vmem:[%s1674_s3 + $0x10] sm:$0xff] }
  0x29   : > { %1159 = vmatpush3.bf16.msra.mxu0 %v1158_v42  ;;  %597 = vmatprep.mubr.f32.mxu0 %v282_v49  ;;  %v1192_v31 = vpack.c.bf16 %v675_v29, %v674_v28  ;;  %v677_v32 = vld [vmem:[%s1674_s3 + $0x18] sm:$0xff]  ;;  %v678_v34 = vld [vmem:[%s1674_s3 + $0x20] sm:$0xff]  ;;  %v679_v35 = vld [vmem:[%s1674_s3 + $0x28] sm:$0xff] }
  0x2a   : > { %528 = vmatmul.mubr.f32.vlgmr.msra.gmra.mrb[0].mxu1 %v279_v43  ;;  %1161 = vmatprep.subr.bf16.mxu0 %v1160_v45  ;;  %v1195_v33 = vpack.c.bf16 %v677_v32, %v676_v30  ;;  %v1198_v36 = vpack.c.bf16 %v679_v35, %v678_v34  ;;  %v680_v37 = vld [vmem:[%s1674_s3 + $0x30] sm:$0xff]  ;;  %v681_v38 = vld [vmem:[%s1674_s3 + $0x38] sm:$0xff]  ;;  %v924_v41 = vld [vmem:[%s1673_s2] ss:$0 sm:$0xff] }
  0x2b   : > { %1190 = vmatpush3.bf16.msra.mxu1 %v1189_v53  ;;  %1059 = vmatprep.mubr.msk.f32.mxu1 %vm1236_vm0, %v1237_v60  ;;  %v1201_v39 = vpack.c.bf16 %v681_v38, %v680_v37  ;;  %v764_v56 = vld [vmem:[%s1676_s5] sm:$0xff]  ;;  %v765_v57 = vld [vmem:[%s1676_s5 + $0x8] sm:$0xff]  ;;  %vm1208_vm5 = vmpackc.low %vm779_vm3, %vm1238_vm4 }
  0x2c   : > { %1191 = vmatprep.subr.bf16.mxu1 %v1235_v50  ;;  %v1204_v59 = vpack.c.bf16 %v765_v57, %v764_v56  ;;  %v926_v1 = vld [vmem:[%s1675_s4] ss:$0 sm:$0xff] }
  0x2d   : > { %1163 = vmatpush3.bf16.msra.mxu0 %v1162_v54 }
  0x2e   : > { %1165 = vmatprep.subr.bf16.mxu0 %v1164_v55  ;;  %1060 = vmatmul.mubr.msk.f32.vlgmr.msra.gmra.mrb[2].mxu1 %vm389_vm1, %v283_v61 }
  0x2f   : > { %1078 = vmatprep.mubr.msk.f32.mxu1 %vm1236_vm0, %v1237_v60  ;;  %1193 = vmatpush3.bf16.msra.mxu1 %v1192_v31 }
  0x30   : > { %1194 = vmatprep.subr.bf16.mxu1 %v1235_v50 }
  0x31   : > { %1167 = vmatpush3.bf16.msra.mxu0 %v1166_v62  ;;  %v766_v62 = vld [vmem:[%s1676_s5 + $0x10] sm:$0xff] }
  0x32   : > { %1169 = vmatprep.subr.bf16.mxu0 %v1168_v63  ;;  %v767_v63 = vld [vmem:[%s1676_s5 + $0x18] sm:$0x3f] }
  0x33   : > { %1196 = vmatpush3.bf16.msra.mxu1 %v1195_v33  ;;  %v1207_v0 = vpack.c.bf16 %v767_v63, %v766_v62 }
  0x34   : > { %1197 = vmatprep.subr.bf16.mxu1 %v1235_v50 }
  0x35   : > { %1171 = vmatpush3.bf16.msra.mxu0 %v1170_v4  ;;  %v928_v4 = vld [vmem:[%s1677_s6] ss:$0 sm:$0xff] }
  0x36   : > { %1173 = vmatprep.subr.bf16.mxu0 %v1172_v5 }
  0x37   : > { %1199 = vmatpush3.bf16.msra.mxu1 %v1198_v36 }
  0x38   : > { %1200 = vmatprep.subr.bf16.mxu1 %v1235_v50 }
  0x39   : > { %1175 = vmatpush3.bf16.msra.mxu0 %v1174_v10 }
  0x3a   : > { %1177 = vmatprep.subr.bf16.mxu0 %v1176_v11 }
  0x3b   : > { %1202 = vmatpush3.bf16.msra.mxu1 %v1201_v39 }
  0x3c   : > { %1203 = vmatprep.subr.bf16.mxu1 %v1235_v50 }
  0x3d   : > { %1179 = vmatpush3.bf16.msra.mxu0 %v1178_v16 }
  0x3e   : > { %1181 = vmatprep.subr.bf16.mxu0 %v1180_v17 }
  0x41   : > { %1183 = vmatpush3.bf16.msra.mxu0 %v1182_v22 }
  0x42   : > { %1185 = vmatprep.subr.bf16.mxu0 %v1184_v23 }
  0x45   : > { %1187 = vmatpush3.bf16.msra.mxu0 %v1186_v26 }
  0x48   : > { %598 = vmatmul.mubr.f32.vlgmr.msra.gmra.mrb[2].mxu0 %v281_v27 }
  0xfb   : > { %v965_v40 = vpop.f32.mrb[0].mxu0 }
  0xfc   : > { %v966_v42 = vpop.f32.mrb[1].mxu0 }
  0xfd   : > { %v1000_v43 = vpop.f32.mrb[0].mxu1  ;;  %v967_v44 = vadd.f32 %v966_v42, %v965_v40 }
  0xfe   : > { %v1001_v45 = vpop.f32.mrb[1].mxu1 }
  0xff   : > { %v1002_v46 = vadd.f32 %v1001_v45, %v1000_v43  ;;  %v460_v47 = vadd.f32 %v967_v44, %v924_v41 }
 0x101   : > { %v530_v48 = vadd.f32 %v1002_v46, %v460_v47  ;;  %v669_v49 = vpop.f32.mrb[2].mxu1 }
 0x102   : > { %v1061_v51 = vpop.f32.mrb[3].mxu1 }
 0x11b   : > { %v1035_v52 = vpop.f32.mrb[2].mxu0 }
 0x11c   : > { %v1036_v53 = vpop.f32.mrb[3].mxu0 }
 0x11d   : > { %v1037_v54 = vadd.f32 %v1036_v53, %v1035_v52 }
 0x11f   : > { %v600_v55 = vadd.f32 %v1037_v54, %v530_v48 }
 0x121   : > { %v670_v58 = vadd.f32 %v669_v49, %v600_v55 }
 0x123   : > { %v673_v61 = vmax.f32 %v670_v58, 0.0 }
 0x125   : > { %1079 = vmatmul.mubr.msk.f32.vlgmr.msra.gmra.mrb[4].mxu1 %vm689_vm2, %v673_v61 }
 0x126   : > { %1205 = vmatpush3.bf16.msra.mxu1 %v1204_v59  ;;  %1089 = vmatprep.mubr.msk.f32.mxu1 %vm1236_vm0, %v1237_v60 }
 0x127   : > { %1206 = vmatprep.subr.bf16.mxu1 %v1235_v50 }
 0x12a   : > { %1209 = vmatpush3.bf16.msk.msra.mxu1 %vm1208_vm5, %v1207_v0 }
 0x1f8   : > { %v759_v60 = vpop.f32.mrb[4].mxu1 }
 0x1f9   : > { %v760_v2 = vadd.f32 %v926_v1, %v759_v60  ;;  %v1080_v50 = vpop.f32.mrb[5].mxu1 }
 0x1fb   : > { %v763_v3 = vmax.f32 %v760_v2, 0.0 }
 0x1fd   : > { %1090 = vmatmul.mubr.msk.f32.vlgmr.msra.gmra.mrb[6].mxu1 %vm775_vm6, %v763_v3 }
 0x2d0   : > { %v849_v5 = vpop.f32.mrb[6].mxu1 }
 0x2d1   : > { %v850_v6 = vadd.f32 %v928_v4, %v849_v5  ;;  %v1091_v7 = vpop.f32.mrb[7].mxu1 }
 0x2d3   : > { %853 = vmax.xlane.f32.xlu0 %v850_v6 }
 0x360   : > { %v854_v8 = vpop.xlane.xlu0 %853 }
 0x361   : > { %v855_v9 = vsub.f32 %v850_v6, %v854_v8 }
 0x363   : > { %v856_v10 = vmul.f32 1.442695, %v855_v9 }
 0x365   : > { %1223 = vpow2.f32 %v856_v10 }
 0x36f   : > { %v1224_v11 = vpop.eup %1223 }
 0x370   : > { %858 = vadd.xlane.f32.xlu0 %v1224_v11 }
 0x3fd   : > { %v859_v12 = vpop.xlane.xlu0 %858 }
 0x3fe   : > { %1225 = vlog2.f32 %v859_v12 }
 0x408   : > { %v1226_v13 = vpop.eup %1225 }
 0x409   : > { %v861_v14 = vmul.f32 0.6931472, %v1226_v13 }
 0x40b   : > { %v862_v15 = vsub.f32 %v855_v9, %v861_v14 }
 0x40d   : > { %863 = vst [vmem:[%s276_s10] sm:$0xff] %v862_v15 }
 0x40e PF: > { %s17_s24 = sadd.s32 1, %s1233_s24  }
 0x40f   : > { %p14_p4 = scmp.ge.s32.totalorder %s17_s24, 5  }
 0x411   :  { %16 = sbr.rel (!%p14_p4) target bundleno = 1 (0x1), region = 78 }

</bundles_post_ra>
